<compile_context>
chip_gen: v7x
topology: tpu7x:2x2x1
jax: 0.10.0
libtpu: 0.0.40
codegen_flags: <defaults>
</compile_context>

<pallas_src>
import functools
import math

import jax
import jax.numpy as jnp
from jax.experimental import pallas as pl
from jax.experimental.pallas import tpu as pltpu


def _ru(x, m):
    return (x + m - 1) // m * m


def _pick_tm(M):
    """Adaptive M tile: small problems get one exact tile, larger ones >=2 tiles."""
    Mr = _ru(M, 8)
    if Mr <= 256:
        return Mr
    if Mr <= 1024:
        return 256   # >= 2 M-tiles -> both TensorCores usable on v7x megacore
    return 512


# ---------------------------------------------------------------------------
# Fast path: whole K in one tile.  out = (X_bf16 @ W_bf16)_f32 + bias
# ---------------------------------------------------------------------------
def _conv1x1_kernel_single_k(x_ref, w_ref, b_ref, o_ref):
    acc = jnp.dot(x_ref[...], w_ref[...], preferred_element_type=jnp.float32)
    o_ref[...] = (acc + b_ref[...]).astype(o_ref.dtype)


def _matmul_bias_single_k(xp, wp, bp, tm, tn):
    Mp, Kp = xp.shape
    _, Np = wp.shape
    return pl.pallas_call(
        _conv1x1_kernel_single_k,
        out_shape=jax.ShapeDtypeStruct((Mp, Np), jnp.float32),
        grid_spec=pltpu.PrefetchScalarGridSpec(
            num_scalar_prefetch=0,
            grid=(Mp // tm, Np // tn),
            in_specs=[
                pl.BlockSpec((tm, Kp), lambda i, j: (i, 0)),
                pl.BlockSpec((Kp, tn), lambda i, j: (0, j)),
                pl.BlockSpec((1, tn), lambda i, j: (0, j)),
            ],
            out_specs=pl.BlockSpec((tm, tn), lambda i, j: (i, j)),
        ),
        compiler_params=pltpu.CompilerParams(
            dimension_semantics=("parallel", "parallel")),
    )(xp, wp, bp)


# ---------------------------------------------------------------------------
# General path: K-loop with f32 accumulator (large Cin).
# ---------------------------------------------------------------------------
def _conv1x1_kernel_kloop(x_ref, w_ref, b_ref, o_ref, acc_ref):
    @pl.when(pl.program_id(2) == 0)
    def _():
        acc_ref[...] = jnp.zeros_like(acc_ref)

    acc_ref[...] += jnp.dot(x_ref[...], w_ref[...],
                            preferred_element_type=jnp.float32)

    @pl.when(pl.program_id(2) == pl.num_programs(2) - 1)
    def _():
        o_ref[...] = (acc_ref[...] + b_ref[...]).astype(o_ref.dtype)


def _matmul_bias_kloop(xp, wp, bp, tm, tk, tn):
    Mp, Kp = xp.shape
    _, Np = wp.shape
    return pl.pallas_call(
        _conv1x1_kernel_kloop,
        out_shape=jax.ShapeDtypeStruct((Mp, Np), jnp.float32),
        grid_spec=pltpu.PrefetchScalarGridSpec(
            num_scalar_prefetch=0,
            grid=(Mp // tm, Np // tn, Kp // tk),
            in_specs=[
                pl.BlockSpec((tm, tk), lambda i, j, k: (i, k)),
                pl.BlockSpec((tk, tn), lambda i, j, k: (k, j)),
                pl.BlockSpec((1, tn), lambda i, j, k: (0, j)),
            ],
            out_specs=pl.BlockSpec((tm, tn), lambda i, j, k: (i, j)),
            scratch_shapes=[pltpu.VMEM((tm, tn), jnp.float32)],
        ),
        compiler_params=pltpu.CompilerParams(
            dimension_semantics=("parallel", "parallel", "arbitrary")),
    )(xp, wp, bp)


# ---------------------------------------------------------------------------
# Parameter construction (deterministic, PyTorch Conv2d-style init).
# Weights/bias are padded to MXU tiles ONCE here, stored in bf16 / f32.
# ---------------------------------------------------------------------------
def make_outconv_params(key, in_channels, out_channels):
    kw, kb = jax.random.split(key)
    bound = 1.0 / math.sqrt(in_channels)          # fan_in = Cin * 1 * 1
    w = jax.random.uniform(kw, (out_channels, in_channels, 1, 1),
                           jnp.float32, -bound, bound)
    b = jax.random.uniform(kb, (out_channels,), jnp.float32, -bound, bound)

    tk = min(512, _ru(in_channels, 128))
    tn = min(256, _ru(out_channels, 128))
    Kp = _ru(in_channels, tk)
    Np = _ru(out_channels, tn)

    # (Cout, Cin, 1, 1) -> (Cin, Cout) matmul layout; pre-pad once, bf16.
    w_mat = w.reshape(out_channels, in_channels).T
    wp = jnp.zeros((Kp, Np), jnp.bfloat16).at[:in_channels, :out_channels].set(
        w_mat.astype(jnp.bfloat16))
    bp = jnp.zeros((1, Np), jnp.float32).at[0, :out_channels].set(b)

    return dict(wp=wp, bp=bp, w=w, b=b,
                cin=in_channels, cout=out_channels, tk=tk, tn=tn)


# ---------------------------------------------------------------------------
# Forward wrapper (NCHW in / NCHW out, like the PyTorch module).
# ---------------------------------------------------------------------------
@functools.partial(jax.jit, static_argnames=("cin", "cout", "tk", "tn"))
def _outconv_jit(x_nchw, wp, bp, *, cin, cout, tk, tn):
    N, C, H, W = x_nchw.shape
    assert C == cin
    M = N * H * W
    x = jnp.transpose(x_nchw, (0, 2, 3, 1)).reshape(M, C)   # NHWC, flat pixels

    tm = _pick_tm(M)
    Mp = _ru(M, tm)
    Kp = wp.shape[0]

    # Single fused pad + cast feeding the kernel.
    xp = jnp.pad(x, ((0, Mp - M), (0, Kp - C))).astype(jnp.bfloat16)

    if Kp == tk:
        # Whole reduction in one MXU tile -> no K grid axis, no accumulator.
        out = _matmul_bias_single_k(xp, wp, bp, tm, tn)
    else:
        out = _matmul_bias_kloop(xp, wp, bp, tm, tk, tn)

    y = out[:M, :cout].reshape(N, H, W, cout)
    return jnp.transpose(y, (0, 3, 1, 2))                   # back to NCHW (f32)


def outconv_forward(x_nchw, params):
    return _outconv_jit(x_nchw, params["wp"], params["bp"],
                        cin=params["cin"], cout=params["cout"],
                        tk=params["tk"], tn=params["tn"])


if __name__ == "__main__":
    key = jax.random.PRNGKey(0)
    kx, kp = jax.random.split(key)

    IN_C, OUT_C = 64, 2                       # UNet OutConv: 64 -> n_classes
    x = jax.random.normal(kx, (2, IN_C, 16, 16), jnp.float32)   # NCHW
    params = make_outconv_params(kp, IN_C, OUT_C)

    out = outconv_forward(x, params)
    out = jax.block_until_ready(out)
    assert out.shape == (2, OUT_C, 16, 16)

    # Pure-JAX f32 reference for the 1x1 conv (loose tol: bf16 operands).
    ref = (jnp.einsum("nchw,oc->nohw", x, params["w"].reshape(OUT_C, IN_C))
           + params["b"][None, :, None, None])
    assert jnp.allclose(out, ref, atol=1e-1, rtol=1e-1), \
        float(jnp.max(jnp.abs(out - ref)))

    print("KERNEL_OK")
</pallas_src>

<mosaic_0001>
module attributes {stable_mosaic.version = 11 : i64} {
  func.func @_conv1x1_kernel_single_k(%arg0: i32, %arg1: i32, %arg2: memref<256x128xbf16, #tpu.memory_space<vmem>>, %arg3: memref<128x128xbf16, #tpu.memory_space<vmem>>, %arg4: memref<1x128xf32, #tpu.memory_space<vmem>>, %arg5: memref<256x128xf32, #tpu.memory_space<vmem>>) attributes {dimension_semantics = [#tpu.dimension_semantics<parallel>, #tpu.dimension_semantics<parallel>], iteration_bounds = array<i64: 2, 1>, scalar_prefetch = 0 : i64, scratch_operands = 0 : i64, tpu.core_type = #tpu.core_type<tc>, window_params = [{transform_indices = @transform_0, window_bounds = array<i64: 256, 128>}, {transform_indices = @transform_1, window_bounds = array<i64: 128, 128>}, {transform_indices = @transform_2, window_bounds = array<i64: 1, 128>}, {transform_indices = @transform_3, window_bounds = array<i64: 256, 128>}]} {
    %c0 = arith.constant 0 : index
    %c0_0 = arith.constant 0 : index
    %0 = vector.load %arg2[%c0, %c0_0] : memref<256x128xbf16, #tpu.memory_space<vmem>>, vector<256x128xbf16>
    %c0_1 = arith.constant 0 : index
    %c0_2 = arith.constant 0 : index
    %1 = vector.load %arg3[%c0_1, %c0_2] : memref<128x128xbf16, #tpu.memory_space<vmem>>, vector<128x128xbf16>
    %cst = arith.constant dense<0.000000e+00> : vector<256x128xf32>
    %2 = tpu.matmul %0, %1, %cst {dimension_numbers = #tpu.dot_dimension_numbers<[1], [0], [0], [1], [0, 0, 1, 1], [], []>} : vector<256x128xbf16>, vector<128x128xbf16>, vector<256x128xf32> -> vector<256x128xf32>
    %c0_3 = arith.constant 0 : index
    %c0_4 = arith.constant 0 : index
    %3 = vector.load %arg4[%c0_3, %c0_4] : memref<1x128xf32, #tpu.memory_space<vmem>>, vector<1x128xf32>
    %4 = vector.broadcast %3 : vector<1x128xf32> to vector<256x128xf32>
    %5 = arith.addf %2, %4 : vector<256x128xf32>
    %c0_5 = arith.constant 0 : index
    %c0_6 = arith.constant 0 : index
    %6 = vector.load %arg5[%c0_5, %c0_6] : memref<256x128xf32, #tpu.memory_space<vmem>>, vector<256x128xf32>
    tpu.vector_store %arg5[%c0_5, %c0_6], %5 {strides = array<i32>} : memref<256x128xf32, #tpu.memory_space<vmem>>, vector<256x128xf32>,
    return
  }
  func.func @transform_0(%arg0: i32, %arg1: i32) -> (i32, i32) {
    %c0_i32 = arith.constant 0 : i32
    %c0_i32_0 = arith.constant 0 : i32
    return %arg0, %c0_i32 : i32, i32
  }
  func.func @transform_1(%arg0: i32, %arg1: i32) -> (i32, i32) {
    %c0_i32 = arith.constant 0 : i32
    %c0_i32_0 = arith.constant 0 : i32
    return %c0_i32, %arg1 : i32, i32
  }
  func.func @transform_2(%arg0: i32, %arg1: i32) -> (i32, i32) {
    %c0_i32 = arith.constant 0 : i32
    %c0_i32_0 = arith.constant 0 : i32
    return %c0_i32, %arg1 : i32, i32
  }
  func.func @transform_3(%arg0: i32, %arg1: i32) -> (i32, i32) {
    %c0_i32 = arith.constant 0 : i32
    return %arg0, %arg1 : i32, i32
  }
}

</mosaic_0001>

<bundles_post_ra>
// kernel: _outconv_jit.1
= control target key start
LH: loop header
LB: loop body
LE: loop exit
PB: predicated region body
PF: predicated region fallthrough
CT: control target
= control target key end

     0   :  { %s938_s12 = smov 0   ;;  %s940_s13 = smov 0   ;;  %s1088_s0 = inlined_call_operand.vmem [shape: bf16[512,128], index: 0, kind: input, shape index: {}]   ;;  %s1089_s1 = inlined_call_operand.vmem [shape: bf16[128,128], index: 1, kind: input, shape index: {}]   ;;  %s1090_s2 = inlined_call_operand.vmem [shape: f32[1,128], index: 2, kind: input, shape index: {}]   ;;  %s1091_s3 = inlined_call_operand.vmem [shape: f32[512,128], index: 3, kind: output, shape index: {}]  }
   0x1   :  { %s942_s14 = smov 0  }
   0x2 LB: > { %s25_s15 = sadd.s32 1, %s912_s13  ;;  %p726_p0 = scmp.ge.s32.totalorder %s916_s14, 1  ;;  %s916_s14 = sphi %s942_s14, %s13_s14   ;;  %s912_s13 = sphi %s940_s13, %s1093_s13   ;;  %s908_s12 = sphi %s938_s12, %s1092_s12  }
   0x3   : > { %p27_p1 = scmp.ge.s32.totalorder %s25_s15, 2  ;;  %p169_p2 = scmp.lt.s32.totalorder %s916_s14, 3 }
   0x5   : > { %s1095_s15 = smov (%p27_p1, %s25_s15), 0  ;;  %p170_p3 = pnand %p726_p0, %p169_p2 }
   0x6   : > { %v870_v0 = vld [vmem:[%s1089_s1] sm:$0xff] (!%p170_p3)   ;;  %s727_s18 = sshll.u32 (!%p170_p3), %s908_s12, 5  ;;  %v871_v1 = vld [vmem:[%s1089_s1 + $0x8] sm:$0xff] (!%p170_p3)   ;;  %v872_v2 = vld [vmem:[%s1089_s1 + $0x10] sm:$0xff] (!%p170_p3)  }
   0x7   : > { %173 = sbr.rel (%p170_p3) target bundleno = 281 (0x119), region = 32  ;;  %p204_p4 = scmp.lt.s32.totalorder (!%p170_p3), %s727_s18, 63  ;;  %782 = vmatprep.subr.bf16.mxu0 (!%p170_p3), %v870_v0  ;;  %830 = vmatprep.subr.bf16.mxu1 (!%p170_p3), %v870_v0  ;;  %v873_v3 = vld [vmem:[%s1089_s1 + $0x18] sm:$0xff] (!%p170_p3)   ;;  %v874_v6 = vld [vmem:[%s1089_s1 + $0x20] sm:$0xff] (!%p170_p3)   ;;  %v875_v7 = vld [vmem:[%s1089_s1 + $0x28] sm:$0xff] (!%p170_p3)  }
   0x8   : > { %783 = vmatpush3.bf16.msra.mxu0 (!%p170_p3), %v870_v0  ;;  %838 = vmatpush3.bf16.msra.mxu1 (!%p170_p3), %v870_v0  ;;  %v876_v8 = vld [vmem:[%s1089_s1 + $0x30] sm:$0xff] (!%p170_p3)   ;;  %v877_v9 = vld [vmem:[%s1089_s1 + $0x38] sm:$0xff] (!%p170_p3)   ;;  %v1008_v24 = vld [vmem:[%s1090_s2] ss:$0 sm:$0xff] (!%p170_p3) }
   0x9   : > { %784 = vmatprep.subr.bf16.mxu0 (!%p170_p3), %v871_v1  ;;  %831 = vmatprep.subr.bf16.mxu1 (!%p170_p3), %v871_v1 }
   0xc   : > { %785 = vmatpush3.bf16.msra.mxu0 (!%p170_p3), %v871_v1  ;;  %839 = vmatpush3.bf16.msra.mxu1 (!%p170_p3), %v871_v1 }
   0xd   : > { %786 = vmatprep.subr.bf16.mxu0 (!%p170_p3), %v872_v2  ;;  %832 = vmatprep.subr.bf16.mxu1 (!%p170_p3), %v872_v2 }
   0xe   : > { %s1097_s18 = smov (!%p204_p4, %s727_s18), 63 }
   0xf   : > { %s728_s23 = sshll.u32 %s1097_s18, 2  ;;  %s730_s10 = sshll.u32 %s1097_s18, 3 }
  0x10   : > { %s971_s26 = scalar_lea.vmem %s1088_s0, %s728_s23  ;;  %787 = vmatpush3.bf16.msra.mxu0 %v872_v2  ;;  %840 = vmatpush3.bf16.msra.mxu1 %v872_v2  ;;  %s1013_s19 = scalar_lea.vmem %s1091_s3, %s730_s10 }
  0x11   : > { %v878_v4 = vld [vmem:[%s971_s26] sm:$0xff]   ;;  %788 = vmatprep.subr.bf16.mxu0 %v873_v3  ;;  %833 = vmatprep.subr.bf16.mxu1 %v873_v3  ;;  %v880_v10 = vld [vmem:[%s971_s26 + $0x8] sm:$0xff]   ;;  %v882_v12 = vld [vmem:[%s971_s26 + $0x10] sm:$0xff]  }
  0x12   : > { %v879_v5 = vld [vmem:[%s971_s26 + $0x40] sm:$0xff]   ;;  %798 = vmatprep.mubr.bf16.mxu0 %v878_v4  ;;  %v881_v11 = vld [vmem:[%s971_s26 + $0x48] sm:$0xff]   ;;  %v883_v13 = vld [vmem:[%s971_s26 + $0x50] sm:$0xff]  }
  0x13   : > { %814 = vmatprep.mubr.bf16.mxu1 %v879_v5  ;;  %v884_v14 = vld [vmem:[%s971_s26 + $0x18] sm:$0xff]   ;;  %v886_v16 = vld [vmem:[%s971_s26 + $0x20] sm:$0xff]   ;;  %v888_v18 = vld [vmem:[%s971_s26 + $0x28] sm:$0xff]  }
  0x14   : > { %789 = vmatpush3.bf16.msra.mxu0 %v873_v3  ;;  %841 = vmatpush3.bf16.msra.mxu1 %v873_v3  ;;  %v885_v15 = vld [vmem:[%s971_s26 + $0x58] sm:$0xff]   ;;  %v887_v17 = vld [vmem:[%s971_s26 + $0x60] sm:$0xff]   ;;  %v889_v19 = vld [vmem:[%s971_s26 + $0x68] sm:$0xff]  }
  0x15   : > { %790 = vmatprep.subr.bf16.mxu0 %v874_v6  ;;  %834 = vmatprep.subr.bf16.mxu1 %v874_v6  ;;  %v890_v20 = vld [vmem:[%s971_s26 + $0x30] sm:$0xff]   ;;  %v892_v22 = vld [vmem:[%s971_s26 + $0x38] sm:$0xff]  }
  0x16   : > { %v891_v21 = vld [vmem:[%s971_s26 + $0x70] sm:$0xff]   ;;  %v893_v23 = vld [vmem:[%s971_s26 + $0x78] sm:$0xff]  }
  0x18   : > { %791 = vmatpush3.bf16.msra.mxu0 %v874_v6  ;;  %842 = vmatpush3.bf16.msra.mxu1 %v874_v6 }
  0x19   : > { %792 = vmatprep.subr.bf16.mxu0 %v875_v7  ;;  %835 = vmatprep.subr.bf16.mxu1 %v875_v7 }
  0x1c   : > { %793 = vmatpush3.bf16.msra.mxu0 %v875_v7  ;;  %843 = vmatpush3.bf16.msra.mxu1 %v875_v7 }
  0x1d   : > { %794 = vmatprep.subr.bf16.mxu0 %v876_v8  ;;  %836 = vmatprep.subr.bf16.mxu1 %v876_v8 }
  0x20   : > { %795 = vmatpush3.bf16.msra.mxu0 %v876_v8  ;;  %844 = vmatpush3.bf16.msra.mxu1 %v876_v8 }
  0x21   : > { %796 = vmatprep.subr.bf16.mxu0 %v877_v9  ;;  %837 = vmatprep.subr.bf16.mxu1 %v877_v9 }
  0x24   : > { %797 = vmatpush3.bf16.msra.mxu0 %v877_v9  ;;  %845 = vmatpush3.bf16.msra.mxu1 %v877_v9 }
  0x27   : > { %799 = vmatmul.mubr.bf16.vlgmr.msra.gmra.mrb[0].mxu0 %v880_v10  ;;  %815 = vmatmul.mubr.bf16.vlgmr.msra.gmra.mrb[0].mxu1 %v881_v11 }
  0x28   : > { %802 = vmatprep.mubr.bf16.mxu0 %v882_v12  ;;  %818 = vmatprep.mubr.bf16.mxu1 %v883_v13 }
  0x2f   : > { %803 = vmatmul.mubr.bf16.gmra.mrb[4].mxu0 %v884_v14  ;;  %819 = vmatmul.mubr.bf16.gmra.mrb[4].mxu1 %v885_v15 }
  0x30   : > { %806 = vmatprep.mubr.bf16.mxu0 %v886_v16  ;;  %822 = vmatprep.mubr.bf16.mxu1 %v887_v17 }
  0x37   : > { %807 = vmatmul.mubr.bf16.gmra.mrb[8].mxu0 %v888_v18  ;;  %823 = vmatmul.mubr.bf16.gmra.mrb[8].mxu1 %v889_v19 }
  0x38   : > { %810 = vmatprep.mubr.bf16.mxu0 %v890_v20  ;;  %826 = vmatprep.mubr.bf16.mxu1 %v891_v21 }
  0x3f   : > { %811 = vmatmul.mubr.bf16.gmra.mrb[12].mxu0 %v892_v22  ;;  %827 = vmatmul.mubr.bf16.gmra.mrb[12].mxu1 %v893_v23 }
  0xfa   : > { %v800_v25 = vpop.f32.mrb[0].mxu0  ;;  %v816_v26 = vpop.f32.mrb[0].mxu1 }
  0xfb   : > { %v468_v27 = vadd.f32 %v800_v25, %v1008_v24  ;;  %v532_v28 = vadd.f32 %v816_v26, %v1008_v24  ;;  %v459_v29 = vpop.f32.mrb[1].mxu0  ;;  %v523_v30 = vpop.f32.mrb[1].mxu1 }
  0xfc   : > { %v460_v31 = vadd.f32 %v1008_v24, %v459_v29  ;;  %v524_v32 = vadd.f32 %v1008_v24, %v523_v30  ;;  %v801_v33 = vpop.f32.mrb[2].mxu0  ;;  %v817_v34 = vpop.f32.mrb[2].mxu1 }
  0xfd   : > { %588 = vst [vmem:[%s1013_s19 + $0x10] sm:$0xff] %v468_v27  ;;  %604 = vst [vmem:[%s1013_s19 + $0x90] sm:$0xff] %v532_v28  ;;  %v471_v35 = vadd.f32 %v801_v33, %v1008_v24  ;;  %v535_v36 = vadd.f32 %v817_v34, %v1008_v24  ;;  %v462_v37 = vpop.f32.mrb[3].mxu0  ;;  %v526_v38 = vpop.f32.mrb[3].mxu1 }
  0xfe   : > { %586 = vst [vmem:[%s1013_s19] sm:$0xff] %v460_v31  ;;  %602 = vst [vmem:[%s1013_s19 + $0x80] sm:$0xff] %v524_v32  ;;  %v463_v39 = vadd.f32 %v1008_v24, %v462_v37  ;;  %v527_v40 = vadd.f32 %v1008_v24, %v526_v38 }
  0xff   : > { %589 = vst [vmem:[%s1013_s19 + $0x18] sm:$0xff] %v471_v35  ;;  %605 = vst [vmem:[%s1013_s19 + $0x98] sm:$0xff] %v535_v36 }
 0x100   : > { %587 = vst [vmem:[%s1013_s19 + $0x8] sm:$0xff] %v463_v39  ;;  %603 = vst [vmem:[%s1013_s19 + $0x88] sm:$0xff] %v527_v40 }
 0x102   : > { %v804_v41 = vpop.f32.mrb[4].mxu0  ;;  %v820_v42 = vpop.f32.mrb[4].mxu1 }
 0x103   : > { %v484_v43 = vadd.f32 %v804_v41, %v1008_v24  ;;  %v548_v44 = vadd.f32 %v820_v42, %v1008_v24  ;;  %v475_v45 = vpop.f32.mrb[5].mxu0  ;;  %v539_v46 = vpop.f32.mrb[5].mxu1 }
 0x104   : > { %v476_v47 = vadd.f32 %v1008_v24, %v475_v45  ;;  %v540_v48 = vadd.f32 %v1008_v24, %v539_v46  ;;  %v805_v49 = vpop.f32.mrb[6].mxu0  ;;  %v821_v50 = vpop.f32.mrb[6].mxu1 }
 0x105   : > { %592 = vst [vmem:[%s1013_s19 + $0x30] sm:$0xff] %v484_v43  ;;  %608 = vst [vmem:[%s1013_s19 + $0xb0] sm:$0xff] %v548_v44  ;;  %v487_v51 = vadd.f32 %v805_v49, %v1008_v24  ;;  %v551_v52 = vadd.f32 %v821_v50, %v1008_v24  ;;  %v478_v53 = vpop.f32.mrb[7].mxu0  ;;  %v542_v54 = vpop.f32.mrb[7].mxu1 }
 0x106   : > { %590 = vst [vmem:[%s1013_s19 + $0x20] sm:$0xff] %v476_v47  ;;  %606 = vst [vmem:[%s1013_s19 + $0xa0] sm:$0xff] %v540_v48  ;;  %v479_v55 = vadd.f32 %v1008_v24, %v478_v53  ;;  %v543_v56 = vadd.f32 %v1008_v24, %v542_v54 }
 0x107   : > { %593 = vst [vmem:[%s1013_s19 + $0x38] sm:$0xff] %v487_v51  ;;  %609 = vst [vmem:[%s1013_s19 + $0xb8] sm:$0xff] %v551_v52 }
 0x108   : > { %591 = vst [vmem:[%s1013_s19 + $0x28] sm:$0xff] %v479_v55  ;;  %607 = vst [vmem:[%s1013_s19 + $0xa8] sm:$0xff] %v543_v56 }
 0x10a   : > { %v808_v57 = vpop.f32.mrb[8].mxu0  ;;  %v824_v58 = vpop.f32.mrb[8].mxu1 }
 0x10b   : > { %v500_v59 = vadd.f32 %v808_v57, %v1008_v24  ;;  %v564_v60 = vadd.f32 %v824_v58, %v1008_v24  ;;  %v491_v61 = vpop.f32.mrb[9].mxu0  ;;  %v555_v62 = vpop.f32.mrb[9].mxu1 }
 0x10c   : > { %v492_v63 = vadd.f32 %v1008_v24, %v491_v61  ;;  %v556_v0 = vadd.f32 %v1008_v24, %v555_v62  ;;  %v809_v1 = vpop.f32.mrb[10].mxu0  ;;  %v825_v2 = vpop.f32.mrb[10].mxu1 }
 0x10d   : > { %596 = vst [vmem:[%s1013_s19 + $0x50] sm:$0xff] %v500_v59  ;;  %612 = vst [vmem:[%s1013_s19 + $0xd0] sm:$0xff] %v564_v60  ;;  %v503_v3 = vadd.f32 %v809_v1, %v1008_v24  ;;  %v567_v4 = vadd.f32 %v825_v2, %v1008_v24  ;;  %v494_v5 = vpop.f32.mrb[11].mxu0  ;;  %v558_v6 = vpop.f32.mrb[11].mxu1 }
 0x10e   : > { %594 = vst [vmem:[%s1013_s19 + $0x40] sm:$0xff] %v492_v63  ;;  %610 = vst [vmem:[%s1013_s19 + $0xc0] sm:$0xff] %v556_v0  ;;  %v495_v7 = vadd.f32 %v1008_v24, %v494_v5  ;;  %v559_v8 = vadd.f32 %v1008_v24, %v558_v6 }
 0x10f   : > { %597 = vst [vmem:[%s1013_s19 + $0x58] sm:$0xff] %v503_v3  ;;  %613 = vst [vmem:[%s1013_s19 + $0xd8] sm:$0xff] %v567_v4 }
 0x110   : > { %595 = vst [vmem:[%s1013_s19 + $0x48] sm:$0xff] %v495_v7  ;;  %611 = vst [vmem:[%s1013_s19 + $0xc8] sm:$0xff] %v559_v8 }
 0x112   : > { %v812_v9 = vpop.f32.mrb[12].mxu0  ;;  %v828_v10 = vpop.f32.mrb[12].mxu1 }
 0x113   : > { %v516_v11 = vadd.f32 %v812_v9, %v1008_v24  ;;  %v580_v12 = vadd.f32 %v828_v10, %v1008_v24  ;;  %v507_v13 = vpop.f32.mrb[13].mxu0  ;;  %v571_v14 = vpop.f32.mrb[13].mxu1 }
 0x114   : > { %v508_v15 = vadd.f32 %v1008_v24, %v507_v13  ;;  %v572_v16 = vadd.f32 %v1008_v24, %v571_v14  ;;  %v813_v17 = vpop.f32.mrb[14].mxu0  ;;  %v829_v18 = vpop.f32.mrb[14].mxu1 }
 0x115   : > { %600 = vst [vmem:[%s1013_s19 + $0x70] sm:$0xff] %v516_v11  ;;  %616 = vst [vmem:[%s1013_s19 + $0xf0] sm:$0xff] %v580_v12  ;;  %v519_v19 = vadd.f32 %v813_v17, %v1008_v24  ;;  %v583_v20 = vadd.f32 %v829_v18, %v1008_v24  ;;  %v510_v21 = vpop.f32.mrb[15].mxu0  ;;  %v574_v22 = vpop.f32.mrb[15].mxu1 }
 0x116   : > { %598 = vst [vmem:[%s1013_s19 + $0x60] sm:$0xff] %v508_v15  ;;  %614 = vst [vmem:[%s1013_s19 + $0xe0] sm:$0xff] %v572_v16  ;;  %v511_v23 = vadd.f32 %v1008_v24, %v510_v21  ;;  %v575_v25 = vadd.f32 %v1008_v24, %v574_v22 }
 0x117   : > { %601 = vst [vmem:[%s1013_s19 + $0x78] sm:$0xff] %v519_v19  ;;  %617 = vst [vmem:[%s1013_s19 + $0xf8] sm:$0xff] %v583_v20 }
 0x118   : > { %599 = vst [vmem:[%s1013_s19 + $0x68] sm:$0xff] %v511_v23  ;;  %615 = vst [vmem:[%s1013_s19 + $0xe8] sm:$0xff] %v575_v25 }
 0x119 PF: > { %s13_s14 = sadd.s32 1, %s916_s14   ;;  %s1092_s12 = smov %s912_s13 }
 0x11a   : > { %p10_p5 = scmp.ge.s32.totalorder %s13_s14, 4   ;;  %s1093_s13 = smov %s1095_s15 }
 0x11c   :  { %12 = sbr.rel (!%p10_p5) target bundleno = 2 (0x2), region = 68 }

</bundles_post_ra>
